<compile_context>
chip_gen: v7x
topology: tpu7x:2x2x1
jax: 0.10.0
libtpu: 0.0.40
codegen_flags: <defaults>
</compile_context>

<pallas_src>
import jax
import jax.numpy as jnp
from jax.experimental import pallas as pl
from jax.experimental.pallas import tpu as pltpu


# Host-side string -> index maps (mirror the torch module).
DX_MAPPING = {'mel': 0, 'nv': 1, 'bcc': 2, 'akiec': 3, 'bkl': 4, 'df': 5, 'vasc': 6}
DX_TYPE_MAPPING = {'histo': 0, 'follow_up': 1, 'consensus': 2, 'confocal': 3}
SEX_MAPPING = {'male': 0, 'female': 1}
LOC_MAPPING = {'face': 0, 'scalp': 1, 'ear': 2, 'back': 3, 'trunk': 4, 'chest': 5,
               'upper extremity': 6, 'lower extremity': 7, 'abdomen': 8, 'neck': 9,
               'genital': 10, 'foot': 11, 'hand': 12, 'acral': 13, 'unknown': 14}

# Vocab sizes 10 / 5 / 3 / 15 -> row offsets of each field inside the folded table.
FIELD_OFFSETS = (0, 10, 15, 18)   # dx, dx_type, sex, localization
N_TABLE_ROWS = 33                 # 10 + 5 + 3 + 15
KT_PAD = 48                       # padded to a multiple of 16 (bf16 sublane tile)


# ----------------------------------------------------------------------------
# Fused kernel:
#   multi-hot-gather (folded emb @ W1) -> +age term -> SiLU -> Linear -> LN
# ----------------------------------------------------------------------------
def _metadata_kernel(idx_ref, age_ref, t_ref, w2_hbm_ref, fvec_ref,
                     o_ref, w2_vmem, w2_sem):
    B = o_ref.shape[0]
    D = o_ref.shape[1]           # dim
    D2 = t_ref.shape[1]          # 2 * dim
    KT = t_ref.shape[0]          # padded folded-table rows (48)

    # Kick off the w2 HBM->VMEM copy immediately; it overlaps everything up to
    # the second matmul.
    w2_cp = pltpu.make_async_copy(w2_hbm_ref, w2_vmem, w2_sem)
    w2_cp.start()

    # Packed small f32 vectors; static, 128-aligned lane slices are free.
    age_row = fvec_ref[:, 0:D2]                       # (1, 2D)  = age_w @ W1_age
    b1_eff  = fvec_ref[:, D2:2 * D2]                  # (1, 2D)  = b1 + age_b @ W1_age
    b2      = fvec_ref[:, 2 * D2:2 * D2 + D]          # (1, D)
    gamma   = fvec_ref[:, 2 * D2 + D:2 * D2 + 2 * D]  # (1, D)
    beta    = fvec_ref[:, 2 * D2 + 2 * D:2 * D2 + 3 * D]

    # Vectorized multi-hot mask: one '1' per field at its (pre-offset) row id.
    # Fields occupy disjoint column ranges, so OR == sum of one-hots.
    idx = idx_ref[...]                                          # (B, 4) int32
    col = jax.lax.broadcasted_iota(jnp.int32, (B, KT), 1)       # (B, KT)
    mh = None
    for f in range(4):
        eq = (col == idx[:, f:f + 1])
        mh = eq if mh is None else (mh | eq)
    mh_bf16 = jnp.where(mh, 1.0, 0.0).astype(jnp.bfloat16)      # (B, KT)

    # h = multihot @ (tables folded through W1) + age * age_row + b1_eff
    h = jnp.dot(mh_bf16, t_ref[...], preferred_element_type=jnp.float32)
    h = h + age_ref[...] * age_row + b1_eff                     # (B, 2D) f32
    h = h * jax.nn.sigmoid(h)                                   # SiLU (f32)

    # Second Linear: wait for the overlapped w2 DMA only now.
    w2_cp.wait()
    y = jnp.dot(h.astype(jnp.bfloat16), w2_vmem[...],
                preferred_element_type=jnp.float32) + b2        # (B, D) f32

    # LayerNorm (eps = 1e-5, affine); single centering pass, rsqrt on the EUP.
    mean = jnp.mean(y, axis=-1, keepdims=True)
    yc = y - mean
    var = jnp.mean(yc * yc, axis=-1, keepdims=True)
    y_norm = yc * jax.lax.rsqrt(var + 1e-5)
    o_ref[...] = (y_norm * gamma + beta).astype(o_ref.dtype)


@jax.jit
def metadata_embedding_pallas(idx_off, age, t_all, w2_bf16, fvec):
    B = age.shape[0]
    D2, D = w2_bf16.shape
    vmem = pl.BlockSpec(memory_space=pltpu.MemorySpace.VMEM)
    return pl.pallas_call(
        _metadata_kernel,
        out_shape=jax.ShapeDtypeStruct((B, D), jnp.float32),
        in_specs=[vmem,                                 # idx_off (B, 4) i32
                  vmem,                                 # age     (B, 1) f32
                  vmem,                                 # t_all   (48, 2D) bf16
                  pl.BlockSpec(memory_space=pl.ANY),    # w2 stays in HBM; manual DMA
                  vmem],                                # fvec    (1, 2*2D + 3*D) f32
        out_specs=vmem,
        scratch_shapes=[pltpu.VMEM((D2, D), jnp.bfloat16),   # w2 landing buffer
                        pltpu.SemaphoreType.DMA],
    )(idx_off, age, t_all, w2_bf16, fvec)


# ----------------------------------------------------------------------------
# Parameters: torch-equivalent raw params + the fold used by the kernel.
# ----------------------------------------------------------------------------
def init_raw_params(key, dim=256):
    ks = jax.random.split(key, 10)
    s = 0.02
    return {
        'dx_embedding':       jax.random.normal(ks[0], (10, dim // 4), jnp.float32) * s,
        'dx_type_embedding':  jax.random.normal(ks[1], (5, dim // 8), jnp.float32) * s,
        'sex_embedding':      jax.random.normal(ks[2], (3, dim // 8), jnp.float32) * s,
        'location_embedding': jax.random.normal(ks[3], (15, dim // 4), jnp.float32) * s,
        'age_w': jax.random.normal(ks[4], (1, dim // 8), jnp.float32) * s,   # Linear(1, D/8)
        'age_b': jax.random.normal(ks[5], (1, dim // 8), jnp.float32) * s,
        'w1':    jax.random.normal(ks[6], (dim, 2 * dim), jnp.float32) * s,  # (in, out)
        'b1':    jax.random.normal(ks[7], (1, 2 * dim), jnp.float32) * s,
        'w2':    jax.random.normal(ks[8], (2 * dim, dim), jnp.float32) * s,
        'b2':    jax.random.normal(ks[9], (1, dim), jnp.float32) * s,
        'gamma': jnp.ones((1, dim), jnp.float32),    # torch LayerNorm default init
        'beta':  jnp.zeros((1, dim), jnp.float32),
    }


def fold_params(raw, dim=256):
    """Fold each embedding table through its row-block of W1 (f32 math, then bf16)."""
    d4, d8 = dim // 4, dim // 8
    comb = 7 * dim // 8                      # = 224: rows of w1 the concat actually feeds
    w1u = raw['w1'][:comb]
    o_dx, o_dxt, o_age, o_sex, o_loc = 0, d4, d4 + d8, d4 + 2 * d8, d4 + 3 * d8
    w1_age = w1u[o_age:o_age + d8]
    t_all_f32 = jnp.concatenate([
        raw['dx_embedding']       @ w1u[o_dx:o_dx + d4],     # (10, 2D)
        raw['dx_type_embedding']  @ w1u[o_dxt:o_dxt + d8],   # (5, 2D)
        raw['sex_embedding']      @ w1u[o_sex:o_sex + d8],   # (3, 2D)
        raw['location_embedding'] @ w1u[o_loc:o_loc + d4],   # (15, 2D)
    ], axis=0)                                               # (33, 2D)
    t_all = jnp.pad(t_all_f32, ((0, KT_PAD - N_TABLE_ROWS), (0, 0))).astype(jnp.bfloat16)
    age_row = raw['age_w'] @ w1_age                          # (1, 2D)
    b1_eff = raw['b1'] + raw['age_b'] @ w1_age               # (1, 2D)
    fvec = jnp.concatenate([age_row, b1_eff, raw['b2'], raw['gamma'], raw['beta']],
                           axis=1)                           # (1, 2*2D + 3*D)
    return {
        't_all': t_all,
        'w2_bf16': raw['w2'].astype(jnp.bfloat16),
        'fvec': fvec,
        # f32 copies kept only for the reference check:
        'age_row': age_row, 'b1_eff': b1_eff,
        'b2': raw['b2'], 'gamma': raw['gamma'], 'beta': raw['beta'],
    }


def metadata_embedding_forward(params, metadata_dict):
    # Host-side string -> index mapping (no Pallas equivalent for dict lookups).
    dx_i = [DX_MAPPING.get(d.lower(), 7) for d in metadata_dict['dx']]
    dxt_i = [DX_TYPE_MAPPING.get(d.lower(), 4) for d in metadata_dict['dx_type']]
    sex_i = [SEX_MAPPING.get(s.lower(), 2) for s in metadata_dict['sex']]
    loc_i = [LOC_MAPPING.get(l.lower(), 14) for l in metadata_dict['localization']]
    idx_off = jnp.array(
        [[d + FIELD_OFFSETS[0], t + FIELD_OFFSETS[1],
          s + FIELD_OFFSETS[2], l + FIELD_OFFSETS[3]]
         for d, t, s, l in zip(dx_i, dxt_i, sex_i, loc_i)], dtype=jnp.int32)   # (B, 4)
    age = jnp.asarray(metadata_dict['age'], jnp.float32).reshape(-1, 1)        # (B, 1)
    return metadata_embedding_pallas(idx_off, age, params['t_all'],
                                     params['w2_bf16'], params['fvec'])


# ----------------------------------------------------------------------------
# References.
# ----------------------------------------------------------------------------
def _reference_folded(params, idx_off, age):
    """Same folded bf16 math as the kernel (gather instead of one-hot matmul)."""
    T = params['t_all'].astype(jnp.float32)                     # (48, 2D)
    h = T[idx_off].sum(axis=1)                                  # (B, 2D)
    h = h + age[:, None] * params['age_row'] + params['b1_eff']
    h = h * jax.nn.sigmoid(h)
    y = jnp.dot(h.astype(jnp.bfloat16), params['w2_bf16'],
                preferred_element_type=jnp.float32) + params['b2']
    mu = y.mean(-1, keepdims=True)
    yc = y - mu
    var = (yc * yc).mean(-1, keepdims=True)
    return yc / jnp.sqrt(var + 1e-5) * params['gamma'] + params['beta']


def _reference_original_f32(raw, dx_i, dxt_i, sex_i, loc_i, age, dim):
    """Unfolded, all-f32 version of the original module (sanity check of the fold)."""
    combined = jnp.concatenate([
        raw['dx_embedding'][dx_i],
        raw['dx_type_embedding'][dxt_i],
        age[:, None] * raw['age_w'] + raw['age_b'],
        raw['sex_embedding'][sex_i],
        raw['location_embedding'][loc_i]], axis=1)              # (B, 7D/8)
    h = combined @ raw['w1'][:7 * dim // 8] + raw['b1']
    h = h * jax.nn.sigmoid(h)
    y = h @ raw['w2'] + raw['b2']
    mu = y.mean(-1, keepdims=True)
    yc = y - mu
    var = (yc * yc).mean(-1, keepdims=True)
    return yc / jnp.sqrt(var + 1e-5) * raw['gamma'] + raw['beta']


if __name__ == "__main__":
    DIM = 256
    key = jax.random.PRNGKey(0)
    pkey, akey = jax.random.split(key)
    raw = init_raw_params(pkey, dim=DIM)
    params = fold_params(raw, dim=DIM)

    # Small deterministic example batch (B = 4).
    metadata = {
        'dx': ['mel', 'nv', 'unknown_dx', 'bkl'],
        'dx_type': ['histo', 'consensus', 'follow_up', 'weird'],
        'age': jax.random.uniform(akey, (4,), jnp.float32),     # normalized 0-1
        'sex': ['male', 'female', 'other', 'female'],
        'localization': ['face', 'back', 'hand', 'somewhere'],
    }

    out = metadata_embedding_forward(params, metadata)
    out = jax.block_until_ready(out)
    assert out.shape == (4, DIM), out.shape
    assert bool(jnp.all(jnp.isfinite(out)))

    # Recompute the indices for the references.
    dx_i = jnp.array([DX_MAPPING.get(d.lower(), 7) for d in metadata['dx']], jnp.int32)
    dxt_i = jnp.array([DX_TYPE_MAPPING.get(d.lower(), 4) for d in metadata['dx_type']], jnp.int32)
    sex_i = jnp.array([SEX_MAPPING.get(s.lower(), 2) for s in metadata['sex']], jnp.int32)
    loc_i = jnp.array([LOC_MAPPING.get(l.lower(), 14) for l in metadata['localization']], jnp.int32)
    age = jnp.asarray(metadata['age'], jnp.float32)
    idx_off = jnp.stack([dx_i + FIELD_OFFSETS[0], dxt_i + FIELD_OFFSETS[1],
                         sex_i + FIELD_OFFSETS[2], loc_i + FIELD_OFFSETS[3]], axis=1)

    # Tight check: same folded bf16 math as the kernel.
    ref = _reference_folded(params, idx_off, age)
    max_err = float(jnp.abs(out - ref).max())
    assert jnp.allclose(out, ref, atol=1e-2, rtol=1e-2), max_err

    # Loose sanity check: unfolded all-f32 original-module math (catches any
    # offset / fold bugs; differences here are only bf16 rounding).
    ref_f32 = _reference_original_f32(raw, dx_i, dxt_i, sex_i, loc_i, age, DIM)
    max_err_f32 = float(jnp.abs(out - ref_f32).max())
    assert jnp.allclose(out, ref_f32, atol=0.2, rtol=0.2), max_err_f32

    print("KERNEL_OK")
</pallas_src>

<mosaic_0001>
module attributes {stable_mosaic.version = 11 : i64} {
  func.func @_metadata_kernel(%arg0: memref<4x4xi32, #tpu.memory_space<vmem>>, %arg1: memref<4x1xf32, #tpu.memory_space<vmem>>, %arg2: memref<48x512xbf16, #tpu.memory_space<vmem>>, %arg3: memref<512x256xbf16, #tpu.memory_space<any>>, %arg4: memref<1x1792xf32, #tpu.memory_space<vmem>>, %arg5: memref<4x256xf32, #tpu.memory_space<vmem>>, %arg6: memref<512x256xbf16, #tpu.memory_space<vmem>>, %arg7: memref<!tpu.dma_semaphore, #tpu.memory_space<semaphore_mem>>) attributes {dimension_semantics = [], scalar_prefetch = 0 : i64, scratch_operands = 2 : i64, tpu.core_type = #tpu.core_type<tc>} {
    tpu.enqueue_dma source(%arg3 : memref<512x256xbf16, #tpu.memory_space<any>>) target(%arg6 : memref<512x256xbf16, #tpu.memory_space<vmem>>) target_semaphore(%arg7 : memref<!tpu.dma_semaphore, #tpu.memory_space<semaphore_mem>>)
    %c0 = arith.constant 0 : index
    %c0_0 = arith.constant 0 : index
    %0 = vector.load %arg4[%c0, %c0_0] : memref<1x1792xf32, #tpu.memory_space<vmem>>, vector<1x512xf32>
    %c0_1 = arith.constant 0 : index
    %c512 = arith.constant 512 : index
    %1 = vector.load %arg4[%c0_1, %c512] : memref<1x1792xf32, #tpu.memory_space<vmem>>, vector<1x512xf32>
    %c0_2 = arith.constant 0 : index
    %c1024 = arith.constant 1024 : index
    %2 = vector.load %arg4[%c0_2, %c1024] : memref<1x1792xf32, #tpu.memory_space<vmem>>, vector<1x256xf32>
    %c0_3 = arith.constant 0 : index
    %c1280 = arith.constant 1280 : index
    %3 = vector.load %arg4[%c0_3, %c1280] : memref<1x1792xf32, #tpu.memory_space<vmem>>, vector<1x256xf32>
    %c0_4 = arith.constant 0 : index
    %c1536 = arith.constant 1536 : index
    %4 = vector.load %arg4[%c0_4, %c1536] : memref<1x1792xf32, #tpu.memory_space<vmem>>, vector<1x256xf32>
    %c0_5 = arith.constant 0 : index
    %c0_6 = arith.constant 0 : index
    %5 = vector.load %arg0[%c0_5, %c0_6] : memref<4x4xi32, #tpu.memory_space<vmem>>, vector<4x4xi32>
    %6 = tpu.iota {dimensions = array<i32: 1>} : vector<4x48xi32>
    %7 = vector.extract_strided_slice %5 {offsets = [0, 0], sizes = [4, 1], strides = [1, 1]} : vector<4x4xi32> to vector<4x1xi32>
    %8 = vector.broadcast %7 : vector<4x1xi32> to vector<4x48xi32>
    %9 = arith.cmpi eq, %6, %8 : vector<4x48xi32>
    %10 = vector.extract_strided_slice %5 {offsets = [0, 1], sizes = [4, 1], strides = [1, 1]} : vector<4x4xi32> to vector<4x1xi32>
    %11 = vector.broadcast %10 : vector<4x1xi32> to vector<4x48xi32>
    %12 = arith.cmpi eq, %6, %11 : vector<4x48xi32>
    %13 = arith.ori %9, %12 : vector<4x48xi1>
    %14 = vector.extract_strided_slice %5 {offsets = [0, 2], sizes = [4, 1], strides = [1, 1]} : vector<4x4xi32> to vector<4x1xi32>
    %15 = vector.broadcast %14 : vector<4x1xi32> to vector<4x48xi32>
    %16 = arith.cmpi eq, %6, %15 : vector<4x48xi32>
    %17 = arith.ori %13, %16 : vector<4x48xi1>
    %18 = vector.extract_strided_slice %5 {offsets = [0, 3], sizes = [4, 1], strides = [1, 1]} : vector<4x4xi32> to vector<4x1xi32>
    %19 = vector.broadcast %18 : vector<4x1xi32> to vector<4x48xi32>
    %20 = arith.cmpi eq, %6, %19 : vector<4x48xi32>
    %21 = arith.ori %17, %20 : vector<4x48xi1>
    %cst = arith.constant 1.000000e+00 : f32
    %cst_7 = arith.constant 0.000000e+00 : f32
    %22 = vector.broadcast %cst : f32 to vector<4x48xf32>
    %23 = vector.broadcast %cst_7 : f32 to vector<4x48xf32>
    %24 = arith.select %21, %22, %23 : vector<4x48xi1>, vector<4x48xf32>
    %25 = arith.truncf %24 : vector<4x48xf32> to vector<4x48xbf16>
    %c0_8 = arith.constant 0 : index
    %c0_9 = arith.constant 0 : index
    %26 = vector.load %arg2[%c0_8, %c0_9] : memref<48x512xbf16, #tpu.memory_space<vmem>>, vector<48x512xbf16>
    %cst_10 = arith.constant dense<0.000000e+00> : vector<4x512xf32>
    %27 = tpu.matmul %25, %26, %cst_10 {dimension_numbers = #tpu.dot_dimension_numbers<[1], [0], [0], [1], [0, 0, 1, 1], [], []>} : vector<4x48xbf16>, vector<48x512xbf16>, vector<4x512xf32> -> vector<4x512xf32>
    %c0_11 = arith.constant 0 : index
    %c0_12 = arith.constant 0 : index
    %28 = vector.load %arg1[%c0_11, %c0_12] : memref<4x1xf32, #tpu.memory_space<vmem>>, vector<4x1xf32>
    %29 = vector.broadcast %28 : vector<4x1xf32> to vector<4x512xf32>
    %30 = vector.broadcast %0 : vector<1x512xf32> to vector<4x512xf32>
    %31 = arith.mulf %29, %30 : vector<4x512xf32>
    %32 = arith.addf %27, %31 : vector<4x512xf32>
    %33 = vector.broadcast %1 : vector<1x512xf32> to vector<4x512xf32>
    %34 = arith.addf %32, %33 : vector<4x512xf32>
    %35 = arith.negf %34 : vector<4x512xf32>
    %36 = math.exp %35 : vector<4x512xf32>
    %cst_13 = arith.constant 1.000000e+00 : f32
    %37 = vector.broadcast %cst_13 : f32 to vector<4x512xf32>
    %38 = arith.addf %37, %36 : vector<4x512xf32>
    %39 = arith.divf %37, %38 : vector<4x512xf32>
    %40 = arith.mulf %34, %39 : vector<4x512xf32>
    tpu.wait_dma2 semaphore(%arg7 : memref<!tpu.dma_semaphore, #tpu.memory_space<semaphore_mem>>) src(%arg3 : memref<512x256xbf16, #tpu.memory_space<any>>) dst(%arg6 : memref<512x256xbf16, #tpu.memory_space<vmem>>)
    %41 = arith.truncf %40 : vector<4x512xf32> to vector<4x512xbf16>
    %c0_14 = arith.constant 0 : index
    %c0_15 = arith.constant 0 : index
    %42 = vector.load %arg6[%c0_14, %c0_15] : memref<512x256xbf16, #tpu.memory_space<vmem>>, vector<512x256xbf16>
    %cst_16 = arith.constant dense<0.000000e+00> : vector<4x256xf32>
    %43 = tpu.matmul %41, %42, %cst_16 {dimension_numbers = #tpu.dot_dimension_numbers<[1], [0], [0], [1], [0, 0, 1, 1], [], []>} : vector<4x512xbf16>, vector<512x256xbf16>, vector<4x256xf32> -> vector<4x256xf32>
    %44 = vector.broadcast %2 : vector<1x256xf32> to vector<4x256xf32>
    %45 = arith.addf %43, %44 : vector<4x256xf32>
    %cst_17 = arith.constant dense<0.000000e+00> : vector<4xf32>
    %46 = vector.multi_reduction <add>, %45, %cst_17 [1] : vector<4x256xf32> to vector<4xf32>
    %47 = vector.shape_cast %46 : vector<4xf32> to vector<4x1xf32>
    %cst_18 = arith.constant 2.560000e+02 : f32
    %48 = vector.broadcast %cst_18 : f32 to vector<4x1xf32>
    %49 = arith.divf %47, %48 : vector<4x1xf32>
    %50 = vector.broadcast %49 : vector<4x1xf32> to vector<4x256xf32>
    %51 = arith.subf %45, %50 : vector<4x256xf32>
    %52 = arith.mulf %51, %51 : vector<4x256xf32>
    %cst_19 = arith.constant dense<0.000000e+00> : vector<4xf32>
    %53 = vector.multi_reduction <add>, %52, %cst_19 [1] : vector<4x256xf32> to vector<4xf32>
    %54 = vector.shape_cast %53 : vector<4xf32> to vector<4x1xf32>
    %cst_20 = arith.constant 2.560000e+02 : f32
    %55 = vector.broadcast %cst_20 : f32 to vector<4x1xf32>
    %56 = arith.divf %54, %55 : vector<4x1xf32>
    %cst_21 = arith.constant 9.99999974E-6 : f32
    %57 = vector.broadcast %cst_21 : f32 to vector<4x1xf32>
    %58 = arith.addf %56, %57 : vector<4x1xf32>
    %59 = math.rsqrt %58 : vector<4x1xf32>
    %60 = vector.broadcast %59 : vector<4x1xf32> to vector<4x256xf32>
    %61 = arith.mulf %51, %60 : vector<4x256xf32>
    %62 = vector.broadcast %3 : vector<1x256xf32> to vector<4x256xf32>
    %63 = arith.mulf %61, %62 : vector<4x256xf32>
    %64 = vector.broadcast %4 : vector<1x256xf32> to vector<4x256xf32>
    %65 = arith.addf %63, %64 : vector<4x256xf32>
    %c0_22 = arith.constant 0 : index
    %c0_23 = arith.constant 0 : index
    %66 = vector.load %arg5[%c0_22, %c0_23] : memref<4x256xf32, #tpu.memory_space<vmem>>, vector<4x256xf32>
    tpu.vector_store %arg5[%c0_22, %c0_23], %65 {strides = array<i32>} : memref<4x256xf32, #tpu.memory_space<vmem>>, vector<4x256xf32>,
    return
  }
}

</mosaic_0001>

<bundles_post_ra>
// kernel: metadata_embedding_pallas.1
= control target key start
LH: loop header
LB: loop body
LE: loop exit
PB: predicated region body
PF: predicated region fallthrough
CT: control target
= control target key end

     0   :  { %10 = vsyncpa [#allocation5], 0  ;;  %s844_s0 = inlined_call_operand.vmem [shape: s32[4,4], index: 0, kind: input, shape index: {}]   ;;  %s845_s1 = inlined_call_operand.vmem [shape: f32[4,1], index: 1, kind: input, shape index: {}]   ;;  %s846_s2 = inlined_call_operand.hbm [shape: bf16[48,512], index: 2, kind: input, shape index: {}]   ;;  %s847_s3 = inlined_call_operand.hbm [shape: bf16[512,256], index: 3, kind: input, shape index: {}]   ;;  %s848_s4 = inlined_call_operand.vmem [shape: f32[1,1792], index: 4, kind: input, shape index: {}]   ;;  %s849_s5 = inlined_call_operand.hbm [shape: f32[4,256], index: 5, kind: output, shape index: {}]  }
   0x1   :  { %11 = vsyncpa [#allocation6], 0  ;;  %s712_s18 = smov [#allocation4]   ;;  %s662_s22 = scalar_lea.hbm %s846_s2, 1536 }
   0x2   :  { %s21_s19 = sshll.u32 %s712_s18, 4  ;;  %p663_p0 = scmp.ne.s32.totalorder %s846_s2, %s662_s22  ;;  %s22_s19 = int_to_ptr.vmem [resolvable:$true] %s21_s19 }
   0x3   :  { %p666_p1 = scmp.lt.u32.totalorder %s662_s22, %s846_s2 }
   0x5   :  { %p668_p2 = pnand %p666_p1, %p663_p0 }
   0x7   :  { %671 = shalt.err (!%p668_p2)
}
   0x8   :  { %s672_s27 = scalar_lea.vmem %s22_s19, 1536  ;;  %p677_p4 = scmp.lt.s32.totalorder %s22_s19, %s22_s19 }
   0x9   :  { %p673_p3 = scmp.ne.s32.totalorder %s22_s19, %s672_s27  ;;  %p678_p5 = scmp.lt.s32.totalorder %s672_s27, %s672_s27 }
   0xb   :  { %p679_p6 = por %p678_p5, %p677_p4 }
   0xd   :  { %p680_p7 = pnand %p679_p6, %p673_p3 }
   0xf   :  { %683 = shalt.err (!%p680_p7)
}
  0x10   :  { %s713_s28 = smov 256   ;;  %s714_s29 = smov 16  }
  0x11   :  { %27 = dma.hbm_to_vmem [thread:$0]  %s846_s2, 1536, %s22_s19, [#allocation5], %s713_s28, %s713_s28, %s714_s29  }
  0x12   :  { %706 = dma.done.wait [#allocation5], 1536  }
  0x13   :  { %707 = vsyncadd [#allocation5], 4294965760  ;;  %s38_s7 = sld [smem:[#allocation0]]   ;;  %50 = sst [smem:[#allocation9]] %s713_s28  ;;  %v715_v0 = vmov 0   ;;  %v716_v1 = vmov 2   ;;  %v75_v21 = vlaneseq }
  0x14   :  { %620 = vset.pattern.permute.xlu0 %v715_v0  ;;  %622 = vset.pattern.permute.xlu1 %v716_v1  ;;  %52 = sst [smem:[#allocation9 + $0x1]] %s713_s28  ;;  %s717_s8 = smov 2   ;;  %v724_v12 = vmov 1   ;;  %v725_v13 = vmov 3   ;;  %v726_v27 = vmov 0.0   ;;  %vm201_vm7 = vcmask 392192  }
  0x15   :  { %237 = vmatprep.mubr.bf16.mxu0 %v715_v0  ;;  %278 = vmatprep.mubr.bf16.mxu1 %v715_v0  ;;  %54 = sst [smem:[#allocation9 + $0x2]] %s717_s8  ;;  %s718_s9 = smov 64   ;;  %v76_v24 = vand.u32 127, %v75_v21  ;;  %v118_v30 = vshrl.u32 %v75_v21, 7 }
  0x16   :  { %56 = sst [smem:[#allocation9 + $0x3]] %s718_s9  ;;  %s719_s10 = smov 128  }
  0x17   :  { %58 = sst [smem:[#allocation9 + $0x4]] %s719_s10  ;;  %s720_s11 = smov [#allocation2]   ;;  %v794_v31 = vsub.s32 0, %v118_v30  ;;  %v127_v32 = vsub.s32 2, %v118_v30  ;;  %v799_v34 = vsub.s32 1, %v118_v30  ;;  %v131_v35 = vsub.s32 3, %v118_v30 }
  0x18   :  { %s46_s12 = sshll.u32 %s720_s11, 4  ;;  %60 = sst [smem:[#allocation9 + $0x5]] %s717_s8  ;;  %s47_s12 = int_to_ptr.vmem [resolvable:$true] %s46_s12 }
  0x19   :  { %s579_s2 = sshll.u32 %s38_s7, 26  ;;  %62 = sst [smem:[#allocation9 + $0x6]] %s719_s10 }
  0x1a   :  { %s580_s13 = sadd.s32 134217728, %s579_s2  ;;  %64 = sst [smem:[#allocation9 + $0x7]] %s718_s9 }
  0x1b   :  { %s721_s14 = smov 4   ;;  %s722_s15 = smov [#allocation3]  }
  0x1c   :  { %66 = sst [smem:[#allocation9 + $0x8]] %s721_s14  ;;  %s723_s16 = smov [#allocation8]  }
  0x1d   :  { %68 = dma.general %s847_s3, 8192, %s47_s12, %s722_s15, %s723_s16, [#allocation9], %s580_s13, 0  }
  0x1e   :  { %v776_v2 = vld [vmem:[%s848_s4 + $0x8] sm:$0x3]  ;;  %v781_v3 = vld [vmem:[%s848_s4 + $0xa] sm:$0x3]  ;;  %v786_v4 = vld [vmem:[%s848_s4 + $0xc] sm:$0x3] }
  0x1f   :  { %v74_v5 = vld [vmem:[%s844_s0] sm:$0xf]  ;;  %v626_v6 = vld [vmem:[#allocation4 + $0x4] ss:$16 sps:$4 sm:$0xff]   ;;  %v628_v7 = vld [vmem:[#allocation4 + $0xc] ss:$16 sps:$4 sm:$0xff]  }
  0x20   :  { %78 = vperm.xlu0 %620, %v74_v5   ;;  %87 = vperm.xlu1 %622, %v74_v5   ;;  %v630_v8 = vld [vmem:[#allocation4] ss:$16 sps:$4 sm:$0xff]   ;;  %v631_v9 = vld [vmem:[#allocation4 + $0x8] ss:$16 sps:$4 sm:$0xff]   ;;  %v632_v10 = vld [vmem:[#allocation4 + $0x24] ss:$16 sps:$4 sm:$0xff]  }
  0x21   :  { %205 = vmatprep.subr.bf16.mxu0 %v626_v6  ;;  %246 = vmatprep.subr.bf16.mxu1 %v628_v7  ;;  %v634_v11 = vld [vmem:[#allocation4 + $0x2c] ss:$16 sps:$4 sm:$0xff]   ;;  %v636_v14 = vld [vmem:[#allocation4 + $0x20] ss:$16 sps:$4 sm:$0xff]   ;;  %v637_v15 = vld [vmem:[#allocation4 + $0x28] ss:$16 sps:$4 sm:$0xff]  }
  0x22   :  { %206 = vmatpush1.bf16.msra.mxu0 %v630_v8  ;;  %247 = vmatpush1.bf16.msra.mxu1 %v631_v9  ;;  %v638_v16 = vld [vmem:[#allocation4 + $0x44] ss:$16 sps:$4 sm:$0xff]   ;;  %v640_v17 = vld [vmem:[#allocation4 + $0x4c] ss:$16 sps:$4 sm:$0xff]   ;;  %v642_v18 = vld [vmem:[#allocation4 + $0x40] ss:$16 sps:$4 sm:$0xff]  }
  0x23   :  { %207 = vmatprep.subr.bf16.mxu0 %v632_v10  ;;  %248 = vmatprep.subr.bf16.mxu1 %v634_v11  ;;  %v643_v19 = vld [vmem:[#allocation4 + $0x48] ss:$16 sps:$4 sm:$0xff]   ;;  %v110_v20 = vld [vmem:[%s845_s1] sm:$0xf]  ;;  %v70_v41 = vld [vmem:[%s848_s4 + $0x4] sm:$0xf] }
  0x24   :  { %621 = vset.pattern.permute.xlu0 %v724_v12  ;;  %623 = vset.pattern.permute.xlu1 %v725_v13  ;;  %v69_v33 = vld [vmem:[%s848_s4] sm:$0xf]  ;;  %v291_v46 = vrot.slane %v70_v41, %v794_v31  ;;  %v299_v47 = vrot.slane %v70_v41, %v127_v32  ;;  %v295_v50 = vrot.slane %v70_v41, %v799_v34 }
  0x25   :  { %82 = vperm.xlu0 %621, %v74_v5   ;;  %92 = vperm.xlu1 %623, %v74_v5   ;;  %v120_v36 = vrot.slane %v69_v33, %v794_v31  ;;  %v128_v37 = vrot.slane %v69_v33, %v127_v32  ;;  %v124_v39 = vrot.slane %v69_v33, %v799_v34 }
  0x26   :  { %208 = vmatpush1.bf16.msra.mxu0 %v636_v14  ;;  %249 = vmatpush1.bf16.msra.mxu1 %v637_v15  ;;  %v132_v40 = vrot.slane %v69_v33, %v131_v35  ;;  %v303_v51 = vrot.slane %v70_v41, %v131_v35 }
  0x27   :  { %209 = vmatprep.subr.bf16.mxu0 %v638_v16  ;;  %250 = vmatprep.subr.bf16.mxu1 %v640_v17 }
  0x29   :  { %624 = vset.pattern.permute.xlu1 %v715_v0  ;;  %625 = vset.pattern.permute.xlu0 %v715_v0 }
  0x2a   :  { %210 = vmatpush1.bf16.msra.mxu0 %v642_v18  ;;  %113 = vperm.xlu1 %624, %v110_v20  }
  0x2b   :  { %251 = vmatpush1.bf16.msra.mxu1 %v643_v19 }
  0x9f   :  { %v79_v22 = vpop.permute.xlu0 %78  ;;  %v88_v23 = vpop.permute.xlu1 %87 }
  0xa0   :  { %vm80_vm0 = vcmp.eq.s32.totalorder %v76_v24, %v79_v22  ;;  %vm89_vm3 = vcmp.eq.s32.totalorder %v76_v24, %v88_v23 }
  0xa4   :  { %v83_v25 = vpop.permute.xlu0 %82  ;;  %v93_v26 = vpop.permute.xlu1 %92 }
  0xa5   :  { %vm84_vm1 = vcmp.eq.s32.totalorder %v76_v24, %v83_v25  ;;  %vm94_vm2 = vcmp.eq.s32.totalorder %v76_v24, %v93_v26 }
  0xa6   :  { %vm85_vm4 = vmor %vm80_vm0, %vm84_vm1 }
  0xa7   :  { %vm90_vm5 = vmor %vm85_vm4, %vm89_vm3 }
  0xa8   :  { %vm95_vm6 = vmor %vm90_vm5, %vm94_vm2 }
  0xa9   :  { %v96_v28 = vsel %vm95_vm6, 1.0, %v726_v27  ;;  %v114_v38 = vpop.permute.xlu1 %113 }
  0xaa   :  { %v97_v29 = vpack.c.bf16 %v96_v28, %v96_v28  ;;  %v137_v42 = vmul.f32 %v120_v36, %v114_v38  ;;  %v139_v43 = vmul.f32 %v128_v37, %v114_v38  ;;  %v138_v44 = vmul.f32 %v124_v39, %v114_v38 }
  0xab   :  { %v140_v45 = vmul.f32 %v132_v40, %v114_v38 }
  0xac   :  { %593 = vmatmul.mubr.msk.bf16.vlgmr.msra.gmra.mrb[0].mxu0 %vm201_vm7, %v97_v29  ;;  %594 = vmatmul.mubr.msk.bf16.vlgmr.msra.gmra.mrb[0].mxu1 %vm201_vm7, %v97_v29 }
 0x17f   :  { %v239_v48 = vpop.f32.mrb[0].mxu0  ;;  %v280_v49 = vpop.f32.mrb[0].mxu1 }
 0x180   :  { %v240_v52 = vadd.f32 %v239_v48, %v137_v42  ;;  %v281_v53 = vadd.f32 %v280_v49, %v139_v43  ;;  %v241_v54 = vpop.f32.mrb[1].mxu0  ;;  %v282_v55 = vpop.f32.mrb[1].mxu1 }
 0x181   :  { %v242_v56 = vadd.f32 %v241_v54, %v138_v44  ;;  %v283_v57 = vadd.f32 %v282_v55, %v140_v45  ;;  %v243_v58 = vpop.f32.mrb[2].mxu0  ;;  %v284_v59 = vpop.f32.mrb[2].mxu1 }
 0x182   :  { %v308_v60 = vadd.f32 %v291_v46, %v240_v52  ;;  %v310_v61 = vadd.f32 %v299_v47, %v281_v53  ;;  %v244_v62 = vpop.f32.mrb[3].mxu0  ;;  %v285_v63 = vpop.f32.mrb[3].mxu1 }
 0x183   :  { %v309_v0 = vadd.f32 %v295_v50, %v242_v56  ;;  %v311_v1 = vadd.f32 %v303_v51, %v283_v57 }
 0x184   :  { %v595_v5 = vmul.f32 -1.442695, %v308_v60  ;;  %v597_v6 = vmul.f32 -1.442695, %v310_v61 }
 0x185   :  { %v596_v7 = vmul.f32 -1.442695, %v309_v0  ;;  %v598_v8 = vmul.f32 -1.442695, %v311_v1 }
 0x186   :  { %644 = vpow2.f32 %v595_v5 }
 0x187   :  { %646 = vpow2.f32 %v597_v6 }
 0x188   :  { %648 = vpow2.f32 %v596_v7 }
 0x189   :  { %650 = vpow2.f32 %v598_v8 }
 0x190   :  { %v645_v9 = vpop.eup %644 }
 0x191   :  { %v647_v10 = vpop.eup %646  ;;  %v324_v11 = vadd.f32 1.0, %v645_v9 }
 0x192   :  { %v649_v12 = vpop.eup %648  ;;  %v326_v13 = vadd.f32 1.0, %v647_v10 }
 0x193   :  { %v651_v14 = vpop.eup %650  ;;  %652 = vrcp.f32 %v324_v11  ;;  %v325_v15 = vadd.f32 1.0, %v649_v12 }
 0x194   :  { %654 = vrcp.f32 %v326_v13  ;;  %v327_v16 = vadd.f32 1.0, %v651_v14 }
 0x195   :  { %656 = vrcp.f32 %v325_v15 }
 0x196   :  { %658 = vrcp.f32 %v327_v16 }
 0x19d   :  { %v653_v17 = vpop.eup %652 }
 0x19e   :  { %v655_v18 = vpop.eup %654  ;;  %v808_v19 = vmul.f32 %v653_v17, %v308_v60 }
 0x19f   :  { %v657_v20 = vpop.eup %656  ;;  %v810_v21 = vmul.f32 %v655_v18, %v310_v61 }
 0x1a0   :  { %v659_v22 = vpop.eup %658  ;;  %v337_v23 = vmul.f32 %v657_v20, %v309_v0 }
 0x1a1   :  { %v339_v24 = vmul.f32 %v659_v22, %v311_v1 }
 0x1a2   :  { %708 = dma.done.wait [#allocation3], 8192 }
 0x1a3   :  { %709 = vsyncadd [#allocation3], 4294959104  ;;  %v345_v25 = vpack.c.bf16 %v337_v23, %v337_v23  ;;  %v347_v26 = vpack.c.bf16 %v339_v24, %v339_v24  ;;  %v349_v27 = vld [vmem:[#allocation2 + $0x8] sm:$0xff]  ;;  %v348_v29 = vld [vmem:[#allocation2] sm:$0xff]  ;;  %vm505_vm8 = vcmask 1043456   ;;  %s727_s4 = smov [#allocation7]  }
 0x1a4   :  { %v381_v28 = vld [vmem:[#allocation2 + $0x108] sm:$0xff]  ;;  %423 = vmatprep.subr.bf16.mxu1 %v349_v27  ;;  %v380_v30 = vld [vmem:[#allocation2 + $0x100] sm:$0xff]  ;;  %v351_v32 = vld [vmem:[#allocation2 + $0x18] sm:$0xff]  ;;  %s564_s30 = sshll.u32 %s727_s4, 4  ;;  %s565_s30 = int_to_ptr.vmem [resolvable:$true] %s564_s30 }
 0x1a5   :  { %455 = vmatprep.mubr.bf16.mxu1 %v345_v25  ;;  %496 = vmatprep.mubr.bf16.mxu0 %v347_v26  ;;  %v383_v33 = vld [vmem:[#allocation2 + $0x118] sm:$0xff]  ;;  %v350_v35 = vld [vmem:[#allocation2 + $0x10] sm:$0xff]  ;;  %v353_v37 = vld [vmem:[#allocation2 + $0x28] sm:$0xff]  ;;  %s684_s6 = scalar_lea.vmem %s565_s30, 128  ;;  %p689_p9 = scmp.lt.s32.totalorder %s565_s30, %s565_s30 }
 0x1a6   :  { %464 = vmatprep.subr.bf16.mxu0 %v381_v28  ;;  %424 = vmatpush1.bf16.msra.mxu1 %v348_v29  ;;  %v382_v36 = vld [vmem:[#allocation2 + $0x110] sm:$0xff]  ;;  %v385_v38 = vld [vmem:[#allocation2 + $0x128] sm:$0xff]  ;;  %v352_v39 = vld [vmem:[#allocation2 + $0x20] sm:$0xff]  ;;  %p685_p8 = scmp.ne.s32.totalorder %s565_s30, %s684_s6  ;;  %p690_p10 = scmp.lt.s32.totalorder %s684_s6, %s684_s6 }
 0x1a7   :  { %465 = vmatpush1.bf16.msra.mxu0 %v380_v30  ;;  %425 = vmatprep.subr.bf16.mxu1 %v351_v32  ;;  %v384_v40 = vld [vmem:[#allocation2 + $0x120] sm:$0xff]  ;;  %v355_v41 = vld [vmem:[#allocation2 + $0x38] sm:$0xff]  ;;  %v354_v43 = vld [vmem:[#allocation2 + $0x30] sm:$0xff] }
 0x1a8   :  { %466 = vmatprep.subr.bf16.mxu0 %v383_v33  ;;  %v387_v42 = vld [vmem:[#allocation2 + $0x138] sm:$0xff]  ;;  %v386_v44 = vld [vmem:[#allocation2 + $0x130] sm:$0xff]  ;;  %v357_v45 = vld [vmem:[#allocation2 + $0x48] sm:$0xff]  ;;  %p691_p11 = por %p690_p10, %p689_p9 }
 0x1a9   :  { %v389_v46 = vld [vmem:[#allocation2 + $0x148] sm:$0xff]  ;;  %v356_v47 = vld [vmem:[#allocation2 + $0x40] sm:$0xff]  ;;  %v359_v49 = vld [vmem:[#allocation2 + $0x58] sm:$0xff] }
 0x1aa   :  { %426 = vmatpush1.bf16.msra.mxu1 %v350_v35  ;;  %v388_v48 = vld [vmem:[#allocation2 + $0x140] sm:$0xff]  ;;  %v391_v50 = vld [vmem:[#allocation2 + $0x158] sm:$0xff]  ;;  %v358_v51 = vld [vmem:[#allocation2 + $0x50] sm:$0xff]  ;;  %p692_p12 = pnand %p691_p11, %p685_p8 }
 0x1ab   :  { %467 = vmatpush1.bf16.msra.mxu0 %v382_v36  ;;  %427 = vmatprep.subr.bf16.mxu1 %v353_v37  ;;  %v390_v52 = vld [vmem:[#allocation2 + $0x150] sm:$0xff]  ;;  %v361_v53 = vld [vmem:[#allocation2 + $0x68] sm:$0xff]  ;;  %v360_v55 = vld [vmem:[#allocation2 + $0x60] sm:$0xff]  ;;  %v344_v36 = vpack.c.bf16 %v808_v19, %v808_v19  ;;  %v346_v37 = vpack.c.bf16 %v810_v21, %v810_v21 }
 0x1ac   :  { %468 = vmatprep.subr.bf16.mxu0 %v385_v38  ;;  %v393_v54 = vld [vmem:[#allocation2 + $0x168] sm:$0xff]  ;;  %v392_v56 = vld [vmem:[#allocation2 + $0x160] sm:$0xff]  ;;  %v363_v57 = vld [vmem:[#allocation2 + $0x78] sm:$0xff]  ;;  %v416_v38 = vrot.slane %v776_v2, %v794_v31 }
 0x1ad   :  { %v395_v58 = vld [vmem:[#allocation2 + $0x178] sm:$0xff]  ;;  %v362_v59 = vld [vmem:[#allocation2 + $0x70] sm:$0xff]  ;;  %v365_v61 = vld [vmem:[#allocation2 + $0x88] sm:$0xff] }
 0x1ae   :  { %428 = vmatpush1.bf16.msra.mxu1 %v352_v39  ;;  %v394_v60 = vld [vmem:[#allocation2 + $0x170] sm:$0xff]  ;;  %v397_v62 = vld [vmem:[#allocation2 + $0x188] sm:$0xff]  ;;  %v364_v63 = vld [vmem:[#allocation2 + $0x80] sm:$0xff]  ;;  %v420_v39 = vrot.slane %v776_v2, %v799_v34 }
 0x1af   :  { %469 = vmatpush1.bf16.msra.mxu0 %v384_v40  ;;  %429 = vmatprep.subr.bf16.mxu1 %v355_v41  ;;  %v396_v0 = vld [vmem:[#allocation2 + $0x180] sm:$0xff]  ;;  %v367_v1 = vld [vmem:[#allocation2 + $0x98] sm:$0xff]  ;;  %v366_v6 = vld [vmem:[#allocation2 + $0x90] sm:$0xff] }
 0x1b0   :  { %470 = vmatprep.subr.bf16.mxu0 %v387_v42  ;;  %v399_v5 = vld [vmem:[#allocation2 + $0x198] sm:$0xff]  ;;  %v398_v7 = vld [vmem:[#allocation2 + $0x190] sm:$0xff]  ;;  %v369_v8 = vld [vmem:[#allocation2 + $0xa8] sm:$0xff] }
 0x1b1   :  { %v401_v9 = vld [vmem:[#allocation2 + $0x1a8] sm:$0xff]  ;;  %v368_v10 = vld [vmem:[#allocation2 + $0xa0] sm:$0xff]  ;;  %v371_v12 = vld [vmem:[#allocation2 + $0xb8] sm:$0xff] }
 0x1b2   :  { %430 = vmatpush1.bf16.msra.mxu1 %v354_v43  ;;  %v400_v11 = vld [vmem:[#allocation2 + $0x1a0] sm:$0xff]  ;;  %v403_v13 = vld [vmem:[#allocation2 + $0x1b8] sm:$0xff]  ;;  %v370_v14 = vld [vmem:[#allocation2 + $0xb0] sm:$0xff] }
 0x1b3   :  { %471 = vmatpush1.bf16.msra.mxu0 %v386_v44  ;;  %431 = vmatprep.subr.bf16.mxu1 %v357_v45  ;;  %v402_v15 = vld [vmem:[#allocation2 + $0x1b0] sm:$0xff]  ;;  %v373_v16 = vld [vmem:[#allocation2 + $0xc8] sm:$0xff]  ;;  %v372_v18 = vld [vmem:[#allocation2 + $0xc0] sm:$0xff] }
 0x1b4   :  { %472 = vmatprep.subr.bf16.mxu0 %v389_v46  ;;  %v405_v17 = vld [vmem:[#allocation2 + $0x1c8] sm:$0xff]  ;;  %v404_v20 = vld [vmem:[#allocation2 + $0x1c0] sm:$0xff]  ;;  %v375_v22 = vld [vmem:[#allocation2 + $0xd8] sm:$0xff] }
 0x1b5   :  { %v407_v23 = vld [vmem:[#allocation2 + $0x1d8] sm:$0xff]  ;;  %v374_v24 = vld [vmem:[#allocation2 + $0xd0] sm:$0xff]  ;;  %v377_v26 = vld [vmem:[#allocation2 + $0xe8] sm:$0xff] }
 0x1b6   :  { %432 = vmatpush1.bf16.msra.mxu1 %v356_v47  ;;  %v406_v25 = vld [vmem:[#allocation2 + $0x1d0] sm:$0xff]  ;;  %v409_v27 = vld [vmem:[#allocation2 + $0x1e8] sm:$0xff]  ;;  %v376_v28 = vld [vmem:[#allocation2 + $0xe0] sm:$0xff] }
 0x1b7   :  { %473 = vmatpush1.bf16.msra.mxu0 %v388_v48  ;;  %433 = vmatprep.subr.bf16.mxu1 %v359_v49  ;;  %v408_v29 = vld [vmem:[#allocation2 + $0x1e0] sm:$0xff]  ;;  %v379_v30 = vld [vmem:[#allocation2 + $0xf8] sm:$0xff]  ;;  %v378_v33 = vld [vmem:[#allocation2 + $0xf0] sm:$0xff] }
 0x1b8   :  { %474 = vmatprep.subr.bf16.mxu0 %v391_v50  ;;  %v411_v32 = vld [vmem:[#allocation2 + $0x1f8] sm:$0xff]  ;;  %v410_v35 = vld [vmem:[#allocation2 + $0x1f0] sm:$0xff] }
 0x1ba   :  { %434 = vmatpush1.bf16.msra.mxu1 %v358_v51 }
 0x1bb   :  { %475 = vmatpush1.bf16.msra.mxu0 %v390_v52  ;;  %435 = vmatprep.subr.bf16.mxu1 %v361_v53 }
 0x1bc   :  { %476 = vmatprep.subr.bf16.mxu0 %v393_v54 }
 0x1be   :  { %436 = vmatpush1.bf16.msra.mxu1 %v360_v55 }
 0x1bf   :  { %477 = vmatpush1.bf16.msra.mxu0 %v392_v56  ;;  %437 = vmatprep.subr.bf16.mxu1 %v363_v57 }
 0x1c0   :  { %478 = vmatprep.subr.bf16.mxu0 %v395_v58 }
 0x1c2   :  { %438 = vmatpush1.bf16.msra.mxu1 %v362_v59 }
 0x1c3   :  { %479 = vmatpush1.bf16.msra.mxu0 %v394_v60  ;;  %439 = vmatprep.subr.bf16.mxu1 %v365_v61 }
 0x1c4   :  { %480 = vmatprep.subr.bf16.mxu0 %v397_v62 }
 0x1c6   :  { %440 = vmatpush1.bf16.msra.mxu1 %v364_v63 }
 0x1c7   :  { %481 = vmatpush1.bf16.msra.mxu0 %v396_v0  ;;  %441 = vmatprep.subr.bf16.mxu1 %v367_v1  ;;  %v531_v0 = vrot.slane %v781_v3, %v794_v31  ;;  %v535_v1 = vrot.slane %v781_v3, %v799_v34 }
 0x1c8   :  { %482 = vmatprep.subr.bf16.mxu0 %v399_v5 }
 0x1ca   :  { %442 = vmatpush1.bf16.msra.mxu1 %v366_v6 }
 0x1cb   :  { %483 = vmatpush1.bf16.msra.mxu0 %v398_v7  ;;  %443 = vmatprep.subr.bf16.mxu1 %v369_v8  ;;  %v544_v8 = vrot.slane %v786_v4, %v794_v31 }
 0x1cc   :  { %484 = vmatprep.subr.bf16.mxu0 %v401_v9  ;;  %v548_v9 = vrot.slane %v786_v4, %v799_v34 }
 0x1ce   :  { %444 = vmatpush1.bf16.msra.mxu1 %v368_v10 }
 0x1cf   :  { %485 = vmatpush1.bf16.msra.mxu0 %v400_v11  ;;  %445 = vmatprep.subr.bf16.mxu1 %v371_v12 }
 0x1d0   :  { %486 = vmatprep.subr.bf16.mxu0 %v403_v13 }
 0x1d2   :  { %446 = vmatpush1.bf16.msra.mxu1 %v370_v14 }
 0x1d3   :  { %487 = vmatpush1.bf16.msra.mxu0 %v402_v15  ;;  %447 = vmatprep.subr.bf16.mxu1 %v373_v16 }
 0x1d4   :  { %488 = vmatprep.subr.bf16.mxu0 %v405_v17 }
 0x1d6   :  { %448 = vmatpush1.bf16.msra.mxu1 %v372_v18 }
 0x1d7   :  { %489 = vmatpush1.bf16.msra.mxu0 %v404_v20  ;;  %449 = vmatprep.subr.bf16.mxu1 %v375_v22 }
 0x1d8   :  { %490 = vmatprep.subr.bf16.mxu0 %v407_v23 }
 0x1da   :  { %450 = vmatpush1.bf16.msra.mxu1 %v374_v24 }
 0x1db   :  { %491 = vmatpush1.bf16.msra.mxu0 %v406_v25  ;;  %451 = vmatprep.subr.bf16.mxu1 %v377_v26 }
 0x1dc   :  { %492 = vmatprep.subr.bf16.mxu0 %v409_v27 }
 0x1de   :  { %452 = vmatpush1.bf16.msra.mxu1 %v376_v28 }
 0x1df   :  { %493 = vmatpush1.bf16.msra.mxu0 %v408_v29  ;;  %453 = vmatprep.subr.bf16.mxu1 %v379_v30 }
 0x1e0   :  { %494 = vmatprep.subr.bf16.mxu0 %v411_v32 }
 0x1e2   :  { %454 = vmatpush1.bf16.msra.mxu1 %v378_v33 }
 0x1e3   :  { %495 = vmatpush1.bf16.msra.mxu0 %v410_v35 }
 0x1e5   :  { %456 = vmatmul.mubr.bf16.vlgmr.msra.gmra.mrb[4].mxu1 %v344_v36 }
 0x1e6   :  { %497 = vmatmul.mubr.bf16.vlgmr.msra.gmra.mrb[4].mxu0 %v346_v37 }
 0x2b8   :  { %v457_v40 = vpop.f32.mrb[4].mxu1 }
 0x2b9   :  { %v498_v41 = vpop.f32.mrb[4].mxu0  ;;  %v458_v42 = vadd.f32 %v457_v40, %v416_v38  ;;  %v459_v43 = vpop.f32.mrb[5].mxu1 }
 0x2ba   :  { %v500_v44 = vpop.f32.mrb[5].mxu0  ;;  %v460_v45 = vadd.f32 %v459_v43, %v420_v39  ;;  %v461_v19 = vpop.f32.mrb[6].mxu1 }
 0x2bb   :  { %v502_v46 = vpop.f32.mrb[6].mxu0  ;;  %v499_v21 = vadd.f32 %v498_v41, %v458_v42  ;;  %v462_v47 = vpop.f32.mrb[7].mxu1 }
 0x2bc   :  { %v503_v48 = vpop.f32.mrb[7].mxu0  ;;  %v501_v49 = vadd.f32 %v500_v44, %v460_v45 }
 0x2bd   :  { %v506_v50 = vsel %vm505_vm8, %v499_v21, 0.0 }
 0x2be   :  { %v507_v51 = vsel %vm505_vm8, %v501_v49, 0.0 }
 0x2bf   :  { %v508_v52 = vadd.f32 %v507_v51, %v506_v50 }
 0x2c1   :  { %509 = vadd.xlane.f32.xlu0 %v508_v52 }
 0x34e   :  { %v510_v2 = vpop.xlane.xlu0 %509 }
 0x34f   :  { %v512_v53 = vmul.f32 0.00390625, %v510_v2 }
 0x351   :  { %v513_v54 = vsub.f32 %v499_v21, %v512_v53  ;;  %v514_v55 = vsub.f32 %v501_v49, %v512_v53 }
 0x353   :  { %v515_v56 = vmul.f32 %v513_v54, %v513_v54  ;;  %v516_v57 = vmul.f32 %v514_v55, %v514_v55 }
 0x355   :  { %v517_v58 = vsel %vm505_vm8, %v515_v56, 0.0  ;;  %v518_v59 = vsel %vm505_vm8, %v516_v57, 0.0 }
 0x356   :  { %v519_v60 = vadd.f32 %v518_v59, %v517_v58 }
 0x358   :  { %520 = vadd.xlane.f32.xlu0 %v519_v60 }
 0x3e5   :  { %v521_v61 = vpop.xlane.xlu0 %520 }
 0x3e6   :  { %v522_v62 = vmul.f32 0.00390625, %v521_v61 }
 0x3e8   :  { %v523_v63 = vadd.f32 1e-05, %v522_v62 }
 0x3ea   :  { %660 = vrsqrt.f32 %v523_v63 }
 0x3f4   :  { %v661_v5 = vpop.eup %660 }
 0x3f5   :  { %v525_v6 = vmul.f32 %v661_v5, %v513_v54  ;;  %v526_v7 = vmul.f32 %v661_v5, %v514_v55 }
 0x3f7   :  { %v538_v10 = vmul.f32 %v531_v0, %v525_v6  ;;  %v539_v11 = vmul.f32 %v535_v1, %v526_v7 }
 0x3f9   :  { %v551_v12 = vadd.f32 %v544_v8, %v538_v10  ;;  %v552_v13 = vadd.f32 %v548_v9, %v539_v11 }
 0x3fb   :  { %v555_v14 = vcombine.low %v551_v12, %v552_v13 }
 0x3fd   :  { %557 = vst [vmem:[#allocation7] sm:$0xff] %v555_v14 }
 0x3fe   :  { %695 = shalt.err (!%p692_p12)
}
 0x3ff   :  { %s696_s9 = scalar_lea.hbm %s849_s5, 128 }
 0x400   :  { %p697_p13 = scmp.ne.s32.totalorder %s849_s5, %s696_s9  ;;  %p700_p0 = scmp.lt.u32.totalorder %s696_s9, %s849_s5 }
 0x402   :  { %p702_p1 = pnand %p700_p0, %p697_p13 }
 0x404   :  { %705 = shalt.err (!%p702_p1)
}
 0x405   :  { %567 = dma.vmem_to_hbm [thread:$0]  %s565_s30, 128, %s849_s5, [#allocation6]  }
 0x406   :  { %710 = dma.done.wait [#allocation6], 128  }
 0x407   :  { %711 = vsyncadd [#allocation6], 4294967168 }
 0x408   :  { %571 = vsyncpa [#allocation5], 1 }
 0x409   :  { %572 = vsyncpa [#allocation6], 1 }
 0x40a   :  { %573 = vsyncmov [#allocation3] }
 0x40d   :  { %s574_s15 = vpop.sfrf %573 }
 0x40e   :  { %p599_p2 = scmp.ne.s32.totalorder %s574_s15, 0 }
 0x410   :  { %578 = shalt.err (%p599_p2)  }

</bundles_post_ra>
